<compile_context>
chip_gen: v7x
topology: tpu7x:2x2x1
jax: 0.10.0
libtpu: 0.0.40
codegen_flags: <defaults>
</compile_context>

<pallas_src>
import functools

import numpy as np
import jax
import jax.numpy as jnp
from jax import lax
from jax.experimental import pallas as pl
from jax.experimental.pallas import tpu as pltpu


# ----------------------------------------------------------------------------
# Deterministic parameter construction (mirrors torchaudio defaults)
# ----------------------------------------------------------------------------
def _round_up(x, m):
    return (x + m - 1) // m * m


def hann_window(n):
    # torch.hann_window(n, periodic=True)
    return 0.5 * (1.0 - np.cos(2.0 * np.pi * np.arange(n) / n))


def hz_to_mel_htk(f):
    return 2595.0 * np.log10(1.0 + f / 700.0)


def mel_to_hz_htk(m):
    return 700.0 * (10.0 ** (m / 2595.0) - 1.0)


def melscale_fbanks(n_freqs, f_min, f_max, n_mels, sample_rate):
    # torchaudio.functional.melscale_fbanks(..., norm=None, mel_scale="htk")
    all_freqs = np.linspace(0.0, sample_rate // 2, n_freqs)
    m_min = hz_to_mel_htk(f_min)
    m_max = hz_to_mel_htk(f_max)
    m_pts = np.linspace(m_min, m_max, n_mels + 2)
    f_pts = mel_to_hz_htk(m_pts)
    f_diff = f_pts[1:] - f_pts[:-1]                      # (n_mels+1,)
    slopes = f_pts[None, :] - all_freqs[:, None]         # (n_freqs, n_mels+2)
    down = -slopes[:, :-2] / f_diff[:-1]                 # (n_freqs, n_mels)
    up = slopes[:, 2:] / f_diff[1:]                      # (n_freqs, n_mels)
    fb = np.maximum(0.0, np.minimum(down, up))
    return fb.astype(np.float32)                         # (n_freqs, n_mels)


def dft_bases(nfft, n_bins):
    # Windowed real / imaginary DFT bases for the first n_bins bins.
    n = np.arange(nfft)[:, None]
    k = np.arange(n_bins)[None, :]
    ang = 2.0 * np.pi * n * k / nfft
    w = hann_window(nfft)[:, None]
    cosw = (w * np.cos(ang)).astype(np.float32)          # (nfft, n_bins)
    sinw = (-w * np.sin(ang)).astype(np.float32)         # (nfft, n_bins)
    return cosw, sinw


def _build_constants(nfft, n_stft, n_mels, mel_f_min, mel_f_max, samplerate):
    """Host-side (trace-time) constants: fused DFT basis + padded filterbank^T."""
    fb_full = melscale_fbanks(n_stft, mel_f_min, mel_f_max, n_mels, samplerate)
    nz_rows = np.flatnonzero(np.any(fb_full != 0.0, axis=1))
    nz = int(nz_rows[-1]) + 1 if nz_rows.size else 1
    # Keep only the nonzero mel band, rounded up to 64 so 2*n_bins is a
    # multiple of 128 (lane-dense).  For the default f_max=8kHz / sr=44.1kHz /
    # nfft=256 config this keeps 64 of 129 bins (only ~48 are actually used).
    # Exact: dropped rows (and padded columns below) have zero mel weight.
    n_bins = _round_up(nz, 64)
    n_mels_pad = _round_up(n_mels, 8)

    # Filterbank, transposed, zero-padded to (n_mels_pad, 2*n_bins):
    #   cols [0, keep)            real mel weights
    #   cols [keep, 2*n_bins)     zero (covers padded bins AND the sin half)
    fbt = np.zeros((n_mels_pad, 2 * n_bins), np.float32)
    keep = min(n_bins, n_stft)
    fbt[:n_mels, :keep] = fb_full[:keep].T

    cosw, sinw = dft_bases(nfft, n_bins)
    basis = np.concatenate([cosw, sinw], axis=1)         # (nfft, 2*n_bins)
    return basis, fbt, n_bins, n_mels_pad


# ----------------------------------------------------------------------------
# Framing (center=True reflect padding, as torch.stft) -- XLA glue
# ----------------------------------------------------------------------------
def _frame_signal(x, nfft, hop):
    """x: (B, T) -> (B, n_frames, nfft)."""
    B, T = x.shape
    pad = nfft // 2
    xp = jnp.pad(x, ((0, 0), (pad, pad)), mode="reflect")
    n_frames = T // hop + 1
    if nfft % hop == 0:
        # hop-block slicing + concat (no gather).  frame i = xp[i*hop : i*hop+nfft]
        r = nfft // hop
        n_hb = n_frames - 1 + r
        hb = xp[:, : n_hb * hop].reshape(B, n_hb, hop)
        frames = jnp.concatenate(
            [hb[:, j:j + n_frames, :] for j in range(r)], axis=-1)
    else:
        idx = jnp.arange(n_frames)[:, None] * hop + jnp.arange(nfft)[None, :]
        frames = xp[:, idx]
    return frames                                        # (B, n_frames, nfft)


# ----------------------------------------------------------------------------
# Pallas kernel: fused STFT-power-mel on a (TILE_M, nfft) frame tile
# ----------------------------------------------------------------------------
def _mel_kernel(frames_ref, basis_ref, fbt_ref, out_ref, *, n_bins):
    # Single lane-dense MXU matmul computes both real and imaginary parts of
    # the windowed DFT: (TILE_M, nfft) x (nfft, 2*n_bins), f32 accumulation.
    spec = jnp.dot(frames_ref[...], basis_ref[...],
                   preferred_element_type=jnp.float32)   # (TILE_M, 2*n_bins) f32
    sq = spec * spec
    # power[:, k] = re_k^2 + im_k^2 for k < n_bins, via an XLU lane rotation
    # (no mid-vreg slice).  Columns >= n_bins carry the mirrored sums but hit
    # identically-zero filterbank columns, so they contribute nothing.
    power = sq + pltpu.roll(sq, n_bins, 1)               # (TILE_M, 2*n_bins) f32

    # Mel projection, produced directly transposed (n_mels_pad, TILE_M) so the
    # output store is lane-dense.  fbt_ref: (n_mels_pad, 2*n_bins).
    out_ref[...] = lax.dot_general(
        fbt_ref[...], power.astype(fbt_ref.dtype),
        dimension_numbers=(((1,), (1,)), ((), ())),
        preferred_element_type=jnp.float32)


# ----------------------------------------------------------------------------
# Wrapper
# ----------------------------------------------------------------------------
@functools.partial(
    jax.jit,
    static_argnames=("nfft", "n_mels", "hop_length", "mel_f_min", "mel_f_max",
                     "samplerate", "tile_m", "matmul_dtype"))
def mel_spectrogram(x, *, nfft, n_mels, hop_length=None,
                    mel_f_min=30.0, mel_f_max=8000.0, samplerate=44100,
                    tile_m=1024, matmul_dtype=jnp.bfloat16):
    """x: (B, T) float32 audio  ->  (B, n_mels, n_frames) float32.

    tile_m: rows of frames per grid step (1024-2048 recommended on all gens).
    matmul_dtype: jnp.bfloat16 (default fast path: bf16 MXU inputs, f32
      accumulation, halved HBM traffic) or jnp.float32 for strict parity.
    """
    hop = nfft // 4 if hop_length is None else hop_length
    # NOTE: torchaudio's MelSpectrogram default is hop_length = win_length // 2;
    # this mirrors the original module's nfft // 4 default.
    n_stft = nfft // 2 + 1
    B, T = x.shape

    # --- framing (XLA glue; fuses under jit) ---------------------------------
    frames = _frame_signal(x, nfft, hop)                 # (B, n_frames, nfft)
    n_frames = frames.shape[1]
    M = B * n_frames

    # --- deterministic parameters (compile-time constants under jit) ---------
    basis, fbt, n_bins, n_mels_pad = _build_constants(
        nfft, n_stft, n_mels, mel_f_min, mel_f_max, samplerate)

    # --- row tiling of the flattened (B * n_frames) dimension ----------------
    TILE_M = min(_round_up(max(int(tile_m), 128), 128), _round_up(M, 128))
    M_pad = _round_up(M, TILE_M)
    grid = (M_pad // TILE_M,)

    mm_dtype = jnp.dtype(matmul_dtype)
    # No tail jnp.pad: the last grid step reads a partial input block
    # (out-of-bounds rows are unspecified) and writes lane-dense into the
    # padded output; the garbage columns are sliced off below.
    frames_flat = frames.reshape(M, nfft).astype(mm_dtype)
    basis_j = jnp.asarray(basis, dtype=mm_dtype)
    fbt_j = jnp.asarray(fbt, dtype=mm_dtype)

    kernel = functools.partial(_mel_kernel, n_bins=n_bins)

    out = pl.pallas_call(
        kernel,
        out_shape=jax.ShapeDtypeStruct((n_mels_pad, M_pad), jnp.float32),
        grid_spec=pltpu.PrefetchScalarGridSpec(
            num_scalar_prefetch=0,
            grid=grid,
            in_specs=[
                pl.BlockSpec((TILE_M, nfft), lambda i: (i, 0)),
                pl.BlockSpec((nfft, 2 * n_bins), lambda i: (0, 0)),
                pl.BlockSpec((n_mels_pad, 2 * n_bins), lambda i: (0, 0)),
            ],
            out_specs=pl.BlockSpec((n_mels_pad, TILE_M), lambda i: (0, i)),
        ),
        compiler_params=pltpu.CompilerParams(
            # Row tiles are independent; on v7x this lets the grid shard across
            # the two TensorCores (no-op on single-TC v5e/v6e).
            dimension_semantics=("parallel",),
            vmem_limit_bytes=32 * 1024 * 1024,            # live VMEM is only a few MiB
        ),
    )(frames_flat, basis_j, fbt_j)

    # (n_mels_pad, M_pad) -> (B, n_mels, n_frames)
    mel = out[:n_mels, :M].reshape(n_mels, B, n_frames)
    return jnp.transpose(mel, (1, 0, 2))


# ----------------------------------------------------------------------------
if __name__ == "__main__":
    NFFT = 256
    N_MELS = 32
    B, T = 2, 4096
    HOP = NFFT // 4

    key = jax.random.PRNGKey(0)
    x = jax.random.normal(key, (B, T), dtype=jnp.float32)

    # pure-JAX reference: same math with the full (untruncated) one-sided DFT
    # bases and mel filterbank, validating fusion, bin truncation and the
    # roll-based power computation.
    n_stft = NFFT // 2 + 1
    frames_ref = _frame_signal(x, NFFT, HOP)
    cosw_f, sinw_f = dft_bases(NFFT, n_stft)
    fb_f = melscale_fbanks(n_stft, 30.0, 8000.0, N_MELS, 44100)
    hp = jax.lax.Precision.HIGHEST
    re = jnp.einsum("bfn,nk->bfk", frames_ref, jnp.asarray(cosw_f), precision=hp)
    im = jnp.einsum("bfn,nk->bfk", frames_ref, jnp.asarray(sinw_f), precision=hp)
    power_ref = re * re + im * im
    mel_ref = np.asarray(jnp.transpose(
        jnp.einsum("bfk,km->bfm", power_ref, jnp.asarray(fb_f), precision=hp),
        (0, 2, 1)))

    n_frames = T // HOP + 1

    # 1) strict f32 parity path; small tile forces a multi-step grid with a
    #    partial tail block (exercises the no-pad boundary handling).
    mel_f32 = jax.block_until_ready(
        mel_spectrogram(x, nfft=NFFT, n_mels=N_MELS, tile_m=128,
                        matmul_dtype=jnp.float32))
    assert mel_f32.shape == (B, N_MELS, n_frames), mel_f32.shape
    np.testing.assert_allclose(np.asarray(mel_f32), mel_ref,
                               rtol=2e-4, atol=1e-2)

    # 2) default fast path: bf16 MXU inputs / f32 accumulation, large tiles.
    mel_bf16 = jax.block_until_ready(
        mel_spectrogram(x, nfft=NFFT, n_mels=N_MELS))
    assert mel_bf16.shape == (B, N_MELS, n_frames), mel_bf16.shape
    np.testing.assert_allclose(np.asarray(mel_bf16), mel_ref,
                               rtol=1e-1, atol=1e-2 * float(mel_ref.max()))

    print("KERNEL_OK")
</pallas_src>

<mosaic_0001>
module attributes {stable_mosaic.version = 11 : i64} {
  func.func @_mel_kernel(%arg0: i32, %arg1: memref<128x256xf32, #tpu.memory_space<vmem>>, %arg2: memref<256x128xf32, #tpu.memory_space<vmem>>, %arg3: memref<32x128xf32, #tpu.memory_space<vmem>>, %arg4: memref<32x128xf32, #tpu.memory_space<vmem>>) attributes {dimension_semantics = [#tpu.dimension_semantics<parallel>], iteration_bounds = array<i64: 2>, scalar_prefetch = 0 : i64, scratch_operands = 0 : i64, tpu.core_type = #tpu.core_type<tc>, window_params = [{transform_indices = @transform_0, window_bounds = array<i64: 128, 256>}, {pipeline_mode = #tpu.pipeline_mode<synchronous>, transform_indices = @transform_1, window_bounds = array<i64: 256, 128>}, {pipeline_mode = #tpu.pipeline_mode<synchronous>, transform_indices = @transform_2, window_bounds = array<i64: 32, 128>}, {transform_indices = @transform_3, window_bounds = array<i64: 32, 128>}]} {
    %c0 = arith.constant 0 : index
    %c0_0 = arith.constant 0 : index
    %0 = vector.load %arg1[%c0, %c0_0] : memref<128x256xf32, #tpu.memory_space<vmem>>, vector<128x256xf32>
    %c0_1 = arith.constant 0 : index
    %c0_2 = arith.constant 0 : index
    %1 = vector.load %arg2[%c0_1, %c0_2] : memref<256x128xf32, #tpu.memory_space<vmem>>, vector<256x128xf32>
    %cst = arith.constant dense<0.000000e+00> : vector<128x128xf32>
    %2 = tpu.matmul %0, %1, %cst {dimension_numbers = #tpu.dot_dimension_numbers<[1], [0], [0], [1], [0, 0, 1, 1], [], []>} : vector<128x256xf32>, vector<256x128xf32>, vector<128x128xf32> -> vector<128x128xf32>
    %3 = arith.mulf %2, %2 : vector<128x128xf32>
    %c64_i32 = arith.constant 64 : i32
    %4 = tpu.dynamic_rotate %3 by %c64_i32 dim 1 : vector<128x128xf32>, i32 -> vector<128x128xf32>
    %5 = arith.addf %3, %4 : vector<128x128xf32>
    %c0_3 = arith.constant 0 : index
    %c0_4 = arith.constant 0 : index
    %6 = vector.load %arg3[%c0_3, %c0_4] : memref<32x128xf32, #tpu.memory_space<vmem>>, vector<32x128xf32>
    %cst_5 = arith.constant dense<0.000000e+00> : vector<32x128xf32>
    %7 = tpu.matmul %6, %5, %cst_5 {dimension_numbers = #tpu.dot_dimension_numbers<[1], [1], [0], [0], [0, 0, 1, 0], [], []>} : vector<32x128xf32>, vector<128x128xf32>, vector<32x128xf32> -> vector<32x128xf32>
    %c0_6 = arith.constant 0 : index
    %c0_7 = arith.constant 0 : index
    %8 = vector.load %arg4[%c0_6, %c0_7] : memref<32x128xf32, #tpu.memory_space<vmem>>, vector<32x128xf32>
    tpu.vector_store %arg4[%c0_6, %c0_7], %7 {strides = array<i32>} : memref<32x128xf32, #tpu.memory_space<vmem>>, vector<32x128xf32>,
    return
  }
  func.func @transform_0(%arg0: i32) -> (i32, i32) {
    %c0_i32 = arith.constant 0 : i32
    %c0_i32_0 = arith.constant 0 : i32
    return %arg0, %c0_i32 : i32, i32
  }
  func.func @transform_1(%arg0: i32) -> (i32, i32) {
    %c0_i32 = arith.constant 0 : i32
    %c0_i32_0 = arith.constant 0 : i32
    %c0_i32_1 = arith.constant 0 : i32
    return %c0_i32, %c0_i32_0 : i32, i32
  }
  func.func @transform_2(%arg0: i32) -> (i32, i32) {
    %c0_i32 = arith.constant 0 : i32
    %c0_i32_0 = arith.constant 0 : i32
    %c0_i32_1 = arith.constant 0 : i32
    return %c0_i32, %c0_i32_0 : i32, i32
  }
  func.func @transform_3(%arg0: i32) -> (i32, i32) {
    %c0_i32 = arith.constant 0 : i32
    %c0_i32_0 = arith.constant 0 : i32
    return %c0_i32, %arg0 : i32, i32
  }
}

</mosaic_0001>

<bundles_post_ra>
// kernel: mel_spectrogram.1
= control target key start
LH: loop header
LB: loop body
LE: loop exit
PB: predicated region body
PF: predicated region fallthrough
CT: control target
= control target key end

     0   :  { %s950_s12 = smov 0   ;;  %s952_s13 = smov 0   ;;  %s1206_s0 = inlined_call_operand.vmem [shape: f32[130,256], index: 0, kind: input, shape index: {}]   ;;  %s1207_s1 = inlined_call_operand.vmem [shape: f32[256,128], index: 1, kind: input, shape index: {}]   ;;  %s1208_s2 = inlined_call_operand.vmem [shape: f32[32,128], index: 2, kind: input, shape index: {}]   ;;  %s1209_s3 = inlined_call_operand.vmem [shape: f32[32,256], index: 3, kind: output, shape index: {}]  }
   0x1   :  { %s954_s14 = smov 0  }
   0x2 LB: > { %s963_s15 = sadd.s32 4294967295, %s927_s14   ;;  %s965_s16 = sadd.s32 1, %s927_s14   ;;  %s927_s14 = sphi %s954_s14, %s1213_s14   ;;  %s923_s13 = sphi %s952_s13, %s1212_s13   ;;  %s919_s12 = sphi %s950_s12, %s1211_s12  }
   0x3   : > { %s85_s17 = ssub.s32 %s927_s14, %s965_s16  ;;  %s88_s18 = sadd.s32 1, %s923_s13 }
   0x4   : > { %p86_p0 = scmp.eq.s32.totalorder %s85_s17, 0  ;;  %p98_p1 = scmp.ne.s32.totalorder %s923_s13, %s919_s12 }
   0x5   : > { %p99_p2 = scmp.eq.s32.totalorder %s963_s15, 1  ;;  %p668_p3 = scmp.ge.s32.totalorder %s927_s14, 1 }
   0x6   : > { %s973_s19 = scalar_select %p86_p0, %s923_s13, %s88_s18  }
   0x7   : > { %p975_p4 = por %p99_p2, %p98_p1  ;;  %p149_p5 = scmp.lt.s32.totalorder %s927_s14, 3 }
   0x9   : > { %p150_p6 = pnand %p668_p3, %p149_p5 }
   0xa   : > { %v243_v0 = vld [vmem:[%s1207_s1 + $0x80] sm:$0xff] (!%p150_p6)  ;;  %v244_v1 = vld [vmem:[%s1207_s1 + $0x88] sm:$0xff] (!%p150_p6)  ;;  %s670_s27 = sshll.u32 (!%p150_p6), %s963_s15, 4  ;;  %v245_v5 = vld [vmem:[%s1207_s1 + $0x90] sm:$0xff] (!%p150_p6)  ;;  %s929_s29 = smov (!%p150_p6), 64  }
   0xb   : > { %153 = sbr.rel (%p150_p6) target bundleno = 675 (0x2a3), region = 32  ;;  %v227_v2 = vld [vmem:[%s1207_s1] sm:$0xff] (!%p150_p6)  ;;  %v816_v3 = vpack.c.bf16 (!%p150_p6), %v244_v1, %v243_v0  ;;  %v228_v4 = vld [vmem:[%s1207_s1 + $0x8] sm:$0xff] (!%p150_p6)  ;;  %v246_v6 = vld [vmem:[%s1207_s1 + $0x98] sm:$0xff] (!%p150_p6)  ;;  %p184_p7 = scmp.lt.s32.totalorder (!%p150_p6), %s670_s27, 16 }
   0xc   : > { %v818_v7 = vpack.c.bf16 (!%p150_p6), %v228_v4, %v227_v2  ;;  %v820_v8 = vpack.c.bf16 (!%p150_p6), %v246_v6, %v245_v5  ;;  %v229_v9 = vld [vmem:[%s1207_s1 + $0x10] sm:$0xff] (!%p150_p6)  ;;  %v230_v10 = vld [vmem:[%s1207_s1 + $0x18] sm:$0xff] (!%p150_p6)  ;;  %v247_v11 = vld [vmem:[%s1207_s1 + $0xa0] sm:$0xff] (!%p150_p6)  ;;  %s175_s10 = sand.u32 (!%p150_p6), 1, %s919_s12  }
   0xd   : > { %817 = vmatprep.subr.bf16.mxu0 (!%p150_p6), %v816_v3  ;;  %v248_v12 = vld [vmem:[%s1207_s1 + $0xa8] sm:$0xff] (!%p150_p6)  ;;  %v822_v13 = vpack.c.bf16 (!%p150_p6), %v230_v10, %v229_v9  ;;  %v231_v15 = vld [vmem:[%s1207_s1 + $0x20] sm:$0xff] (!%p150_p6)  ;;  %v249_v17 = vld [vmem:[%s1207_s1 + $0xb0] sm:$0xff] (!%p150_p6)  ;;  %s669_s11 = sshll.u32 (!%p150_p6), %s175_s10, 5 }
   0xe   : > { %819 = vmatpush3.bf16.msra.mxu0 (!%p150_p6), %v818_v7  ;;  %v824_v14 = vpack.c.bf16 (!%p150_p6), %v248_v12, %v247_v11  ;;  %v232_v16 = vld [vmem:[%s1207_s1 + $0x28] sm:$0xff] (!%p150_p6)  ;;  %v250_v18 = vld [vmem:[%s1207_s1 + $0xb8] sm:$0xff] (!%p150_p6)  ;;  %v233_v21 = vld [vmem:[%s1207_s1 + $0x30] sm:$0xff] (!%p150_p6)  ;;  %s177_s14 = scalar_lea.vmem (!%p150_p6), [#allocation2], %s669_s11 }
   0xf   : > { %821 = vmatprep.subr.bf16.mxu0 (!%p150_p6), %v820_v8  ;;  %v826_v19 = vpack.c.bf16 (!%p150_p6), %v232_v16, %v231_v15  ;;  %v828_v20 = vpack.c.bf16 (!%p150_p6), %v250_v18, %v249_v17  ;;  %v234_v22 = vld [vmem:[%s1207_s1 + $0x38] sm:$0xff] (!%p150_p6)  ;;  %v251_v23 = vld [vmem:[%s1207_s1 + $0xc0] sm:$0xff] (!%p150_p6)  ;;  %v252_v24 = vld [vmem:[%s1207_s1 + $0xc8] sm:$0xff] (!%p150_p6) }
  0x10   : > { %v830_v26 = vpack.c.bf16 (!%p150_p6), %v234_v22, %v233_v21  ;;  %v832_v27 = vpack.c.bf16 (!%p150_p6), %v252_v24, %v251_v23  ;;  %v235_v28 = vld [vmem:[%s1207_s1 + $0x40] sm:$0xff] (!%p150_p6)  ;;  %v236_v29 = vld [vmem:[%s1207_s1 + $0x48] sm:$0xff] (!%p150_p6)  ;;  %v253_v30 = vld [vmem:[%s1207_s1 + $0xd0] sm:$0xff] (!%p150_p6) }
  0x11   : > { %v254_v31 = vld [vmem:[%s1207_s1 + $0xd8] sm:$0xff] (!%p150_p6)  ;;  %v834_v32 = vpack.c.bf16 (!%p150_p6), %v236_v29, %v235_v28  ;;  %v237_v34 = vld [vmem:[%s1207_s1 + $0x50] sm:$0xff] (!%p150_p6)  ;;  %v255_v36 = vld [vmem:[%s1207_s1 + $0xe0] sm:$0xff] (!%p150_p6) }
  0x12   : > { %s1215_s27 = smov (!%p184_p7, %s670_s27), 16  ;;  %823 = vmatpush3.bf16.msra.mxu0 %v822_v13  ;;  %v836_v33 = vpack.c.bf16 %v254_v31, %v253_v30  ;;  %v238_v35 = vld [vmem:[%s1207_s1 + $0x58] sm:$0xff]  ;;  %v256_v37 = vld [vmem:[%s1207_s1 + $0xe8] sm:$0xff]  ;;  %v239_v40 = vld [vmem:[%s1207_s1 + $0x60] sm:$0xff]  ;;  %s674_s17 = sshll.u32 (%p975_p4), %s963_s15, 3 }
  0x13   : > { %s677_s25 = sshll.u32 %s1215_s27, 4  ;;  %825 = vmatprep.subr.bf16.mxu0 %v824_v14  ;;  %v838_v38 = vpack.c.bf16 %v238_v35, %v237_v34  ;;  %v840_v39 = vpack.c.bf16 %v256_v37, %v255_v36  ;;  %v240_v41 = vld [vmem:[%s1207_s1 + $0x68] sm:$0xff]  ;;  %v257_v42 = vld [vmem:[%s1207_s1 + $0xf0] sm:$0xff]  ;;  %v258_v43 = vld [vmem:[%s1207_s1 + $0xf8] sm:$0xff]  ;;  %s569_s21 = scalar_lea.vmem (%p975_p4), %s1209_s3, %s674_s17 }
  0x14   : > { %s1025_s6 = scalar_lea.vmem %s1206_s0, %s677_s25  ;;  %v842_v44 = vpack.c.bf16 %v240_v41, %v239_v40  ;;  %v844_v45 = vpack.c.bf16 %v258_v43, %v257_v42  ;;  %v241_v46 = vld [vmem:[%s1207_s1 + $0x70] sm:$0xff]  ;;  %v242_v47 = vld [vmem:[%s1207_s1 + $0x78] sm:$0xff] }
  0x15   : > { %v196_v25 = vld [vmem:[%s1025_s6 + $0x8] sm:$0xff]  ;;  %v846_v48 = vpack.c.bf16 %v242_v47, %v241_v46  ;;  %v195_v49 = vld [vmem:[%s1025_s6] sm:$0xff]  ;;  %v198_v50 = vld [vmem:[%s1025_s6 + $0x18] sm:$0xff] }
  0x16   : > { %323 = vmatprep.mubr.f32.mxu0 %v196_v25  ;;  %827 = vmatpush3.bf16.msra.mxu0 %v826_v19  ;;  %v197_v51 = vld [vmem:[%s1025_s6 + $0x10] sm:$0xff]  ;;  %v200_v52 = vld [vmem:[%s1025_s6 + $0x28] sm:$0xff]  ;;  %v199_v53 = vld [vmem:[%s1025_s6 + $0x20] sm:$0xff] }
  0x17   : > { %829 = vmatprep.subr.bf16.mxu0 %v828_v20  ;;  %v202_v54 = vld [vmem:[%s1025_s6 + $0x38] sm:$0xff]  ;;  %v201_v55 = vld [vmem:[%s1025_s6 + $0x30] sm:$0xff]  ;;  %v204_v56 = vld [vmem:[%s1025_s6 + $0x48] sm:$0xff] }
  0x18   : > { %v203_v57 = vld [vmem:[%s1025_s6 + $0x40] sm:$0xff]  ;;  %v206_v58 = vld [vmem:[%s1025_s6 + $0x58] sm:$0xff]  ;;  %v205_v59 = vld [vmem:[%s1025_s6 + $0x50] sm:$0xff] }
  0x19   : > { %v208_v60 = vld [vmem:[%s1025_s6 + $0x68] sm:$0xff]  ;;  %v207_v61 = vld [vmem:[%s1025_s6 + $0x60] sm:$0xff]  ;;  %v210_v62 = vld [vmem:[%s1025_s6 + $0x78] sm:$0xff] }
  0x1a   : > { %831 = vmatpush3.bf16.msra.mxu0 %v830_v26  ;;  %v209_v63 = vld [vmem:[%s1025_s6 + $0x70] sm:$0xff]  ;;  %v212_v0 = vld [vmem:[%s1025_s6 + $0x88] sm:$0xff]  ;;  %v211_v1 = vld [vmem:[%s1025_s6 + $0x80] sm:$0xff] }
  0x1b   : > { %833 = vmatprep.subr.bf16.mxu0 %v832_v27  ;;  %v214_v2 = vld [vmem:[%s1025_s6 + $0x98] sm:$0xff]  ;;  %v213_v3 = vld [vmem:[%s1025_s6 + $0x90] sm:$0xff]  ;;  %v216_v4 = vld [vmem:[%s1025_s6 + $0xa8] sm:$0xff] }
  0x1c   : > { %v215_v5 = vld [vmem:[%s1025_s6 + $0xa0] sm:$0xff]  ;;  %v218_v6 = vld [vmem:[%s1025_s6 + $0xb8] sm:$0xff]  ;;  %v217_v7 = vld [vmem:[%s1025_s6 + $0xb0] sm:$0xff] }
  0x1d   : > { %v220_v8 = vld [vmem:[%s1025_s6 + $0xc8] sm:$0xff]  ;;  %v219_v9 = vld [vmem:[%s1025_s6 + $0xc0] sm:$0xff]  ;;  %v222_v10 = vld [vmem:[%s1025_s6 + $0xd8] sm:$0xff] }
  0x1e   : > { %835 = vmatpush3.bf16.msra.mxu0 %v834_v32  ;;  %v221_v11 = vld [vmem:[%s1025_s6 + $0xd0] sm:$0xff]  ;;  %v224_v12 = vld [vmem:[%s1025_s6 + $0xe8] sm:$0xff]  ;;  %v223_v13 = vld [vmem:[%s1025_s6 + $0xe0] sm:$0xff] }
  0x1f   : > { %837 = vmatprep.subr.bf16.mxu0 %v836_v33  ;;  %v226_v14 = vld [vmem:[%s1025_s6 + $0xf8] sm:$0xff]  ;;  %v225_v15 = vld [vmem:[%s1025_s6 + $0xf0] sm:$0xff] }
  0x22   : > { %839 = vmatpush3.bf16.msra.mxu0 %v838_v38 }
  0x23   : > { %841 = vmatprep.subr.bf16.mxu0 %v840_v39 }
  0x26   : > { %843 = vmatpush3.bf16.msra.mxu0 %v842_v44 }
  0x27   : > { %845 = vmatprep.subr.bf16.mxu0 %v844_v45 }
  0x2a   : > { %847 = vmatpush3.bf16.msra.mxu0 %v846_v48 }
  0x2d   : > { %324 = vmatmul.mubr.f32.vlgmr.msra.gmra.mrb[0].mxu0 %v195_v49 }
  0x2e   : > { %328 = vmatprep.mubr.f32.mxu0 %v198_v50 }
  0x31   : > { %329 = vmatmul.mubr.f32.gmra.mrb[2].mxu0 %v197_v51 }
  0x32   : > { %333 = vmatprep.mubr.f32.mxu0 %v200_v52 }
  0x35   : > { %334 = vmatmul.mubr.f32.gmra.mrb[4].mxu0 %v199_v53 }
  0x36   : > { %338 = vmatprep.mubr.f32.mxu0 %v202_v54 }
  0x39   : > { %339 = vmatmul.mubr.f32.gmra.mrb[6].mxu0 %v201_v55 }
  0x3a   : > { %343 = vmatprep.mubr.f32.mxu0 %v204_v56 }
  0x3d   : > { %344 = vmatmul.mubr.f32.gmra.mrb[8].mxu0 %v203_v57 }
  0x3e   : > { %348 = vmatprep.mubr.f32.mxu0 %v206_v58 }
  0x41   : > { %349 = vmatmul.mubr.f32.gmra.mrb[10].mxu0 %v205_v59 }
  0x42   : > { %353 = vmatprep.mubr.f32.mxu0 %v208_v60 }
  0x45   : > { %354 = vmatmul.mubr.f32.gmra.mrb[12].mxu0 %v207_v61 }
  0x46   : > { %358 = vmatprep.mubr.f32.mxu0 %v210_v62 }
  0x49   : > { %359 = vmatmul.mubr.f32.gmra.mrb[14].mxu0 %v209_v63 }
  0x4a   : > { %363 = vmatprep.mubr.f32.mxu0 %v212_v0 }
  0x4d   : > { %364 = vmatmul.mubr.f32.gmra.mrb[16].mxu0 %v211_v1 }
  0x4e   : > { %368 = vmatprep.mubr.f32.mxu0 %v214_v2 }
  0x51   : > { %369 = vmatmul.mubr.f32.gmra.mrb[18].mxu0 %v213_v3 }
  0x52   : > { %373 = vmatprep.mubr.f32.mxu0 %v216_v4 }
  0x55   : > { %374 = vmatmul.mubr.f32.gmra.mrb[20].mxu0 %v215_v5 }
  0x56   : > { %378 = vmatprep.mubr.f32.mxu0 %v218_v6 }
  0x59   : > { %379 = vmatmul.mubr.f32.gmra.mrb[22].mxu0 %v217_v7 }
  0x5a   : > { %383 = vmatprep.mubr.f32.mxu0 %v220_v8 }
  0x5d   : > { %384 = vmatmul.mubr.f32.gmra.mrb[24].mxu0 %v219_v9 }
  0x5e   : > { %388 = vmatprep.mubr.f32.mxu0 %v222_v10 }
  0x61   : > { %389 = vmatmul.mubr.f32.gmra.mrb[26].mxu0 %v221_v11  ;;  %v468_v11 = vld [vmem:[%s1208_s2] sm:$0xff] }
  0x62   : > { %393 = vmatprep.mubr.f32.mxu0 %v224_v12  ;;  %810 = vmatprep.mubr.f32.mxu1 %v468_v11 }
  0x65   : > { %394 = vmatmul.mubr.f32.gmra.mrb[28].mxu0 %v223_v13 }
  0x66   : > { %398 = vmatprep.mubr.f32.mxu0 %v226_v14 }
  0x69   : > { %399 = vmatmul.mubr.f32.gmra.mrb[30].mxu0 %v225_v15 }
 0x100   : > { %v710_v16 = vpop.f32.mrb[0].mxu0 }
 0x101   : > { %v711_v17 = vpop.f32.mrb[1].mxu0 }
 0x102   : > { %v712_v18 = vadd.f32 %v711_v17, %v710_v16 }
 0x104   : > { %v1113_v19 = vmul.f32 %v712_v18, %v712_v18  ;;  %v713_v20 = vpop.f32.mrb[2].mxu0 }
 0x105   : > { %v714_v21 = vpop.f32.mrb[3].mxu0 }
 0x106   : > { %v715_v22 = vadd.f32 %v714_v21, %v713_v20  ;;  %420 = vrot.lane.b32.xlu0 %v1113_v19, %s929_s29 }
 0x108   : > { %v1117_v23 = vmul.f32 %v715_v22, %v715_v22  ;;  %v716_v24 = vpop.f32.mrb[4].mxu0 }
 0x109   : > { %v717_v25 = vpop.f32.mrb[5].mxu0 }
 0x10a   : > { %v718_v26 = vadd.f32 %v717_v25, %v716_v24  ;;  %422 = vrot.lane.b32.xlu0 %v1117_v23, %s929_s29 }
 0x10c   : > { %v1121_v27 = vmul.f32 %v718_v26, %v718_v26  ;;  %v719_v28 = vpop.f32.mrb[6].mxu0 }
 0x10d   : > { %v720_v29 = vpop.f32.mrb[7].mxu0 }
 0x10e   : > { %v721_v30 = vadd.f32 %v720_v29, %v719_v28  ;;  %424 = vrot.lane.b32.xlu1 %v1121_v27, %s929_s29 }
 0x110   : > { %v1125_v31 = vmul.f32 %v721_v30, %v721_v30  ;;  %v722_v32 = vpop.f32.mrb[8].mxu0 }
 0x111   : > { %v723_v33 = vpop.f32.mrb[9].mxu0 }
 0x112   : > { %v724_v34 = vadd.f32 %v723_v33, %v722_v32  ;;  %426 = vrot.lane.b32.xlu1 %v1125_v31, %s929_s29 }
 0x114   : > { %v1129_v35 = vmul.f32 %v724_v34, %v724_v34  ;;  %v725_v36 = vpop.f32.mrb[10].mxu0 }
 0x115   : > { %v726_v37 = vpop.f32.mrb[11].mxu0 }
 0x116   : > { %v727_v38 = vadd.f32 %v726_v37, %v725_v36  ;;  %428 = vrot.lane.b32.xlu0 %v1129_v35, %s929_s29 }
 0x118   : > { %v1133_v39 = vmul.f32 %v727_v38, %v727_v38  ;;  %v728_v40 = vpop.f32.mrb[12].mxu0 }
 0x119   : > { %v729_v41 = vpop.f32.mrb[13].mxu0 }
 0x11a   : > { %v730_v42 = vadd.f32 %v729_v41, %v728_v40  ;;  %430 = vrot.lane.b32.xlu1 %v1133_v39, %s929_s29 }
 0x11c   : > { %v1137_v43 = vmul.f32 %v730_v42, %v730_v42  ;;  %v731_v44 = vpop.f32.mrb[14].mxu0 }
 0x11d   : > { %v732_v45 = vpop.f32.mrb[15].mxu0 }
 0x11e   : > { %v733_v46 = vadd.f32 %v732_v45, %v731_v44  ;;  %432 = vrot.lane.b32.xlu0 %v1137_v43, %s929_s29 }
 0x120   : > { %v1141_v47 = vmul.f32 %v733_v46, %v733_v46  ;;  %v734_v48 = vpop.f32.mrb[16].mxu0 }
 0x121   : > { %v735_v49 = vpop.f32.mrb[17].mxu0 }
 0x122   : > { %v736_v50 = vadd.f32 %v735_v49, %v734_v48  ;;  %434 = vrot.lane.b32.xlu1 %v1141_v47, %s929_s29 }
 0x124   : > { %v1145_v51 = vmul.f32 %v736_v50, %v736_v50  ;;  %v737_v52 = vpop.f32.mrb[18].mxu0 }
 0x125   : > { %v738_v53 = vpop.f32.mrb[19].mxu0 }
 0x126   : > { %v739_v54 = vadd.f32 %v738_v53, %v737_v52  ;;  %436 = vrot.lane.b32.xlu0 %v1145_v51, %s929_s29 }
 0x128   : > { %v1149_v55 = vmul.f32 %v739_v54, %v739_v54  ;;  %v740_v56 = vpop.f32.mrb[20].mxu0 }
 0x129   : > { %v741_v57 = vpop.f32.mrb[21].mxu0 }
 0x12a   : > { %v742_v58 = vadd.f32 %v741_v57, %v740_v56  ;;  %438 = vrot.lane.b32.xlu1 %v1149_v55, %s929_s29  ;;  %v469_v57 = vld [vmem:[%s1208_s2 + $0x8] sm:$0xff] }
 0x12c   : > { %v1153_v59 = vmul.f32 %v742_v58, %v742_v58  ;;  %v743_v60 = vpop.f32.mrb[22].mxu0  ;;  %v470_v58 = vld [vmem:[%s1208_s2 + $0x10] sm:$0xff] }
 0x12d   : > { %v744_v61 = vpop.f32.mrb[23].mxu0 }
 0x12e   : > { %v745_v62 = vadd.f32 %v744_v61, %v743_v60  ;;  %440 = vrot.lane.b32.xlu0 %v1153_v59, %s929_s29 }
 0x130   : > { %v415_v63 = vmul.f32 %v745_v62, %v745_v62  ;;  %v746_v0 = vpop.f32.mrb[24].mxu0 }
 0x131   : > { %v747_v1 = vpop.f32.mrb[25].mxu0 }
 0x132   : > { %v748_v2 = vadd.f32 %v747_v1, %v746_v0  ;;  %442 = vrot.lane.b32.xlu1 %v415_v63, %s929_s29 }
 0x134   : > { %v1158_v3 = vmul.f32 %v748_v2, %v748_v2  ;;  %v749_v4 = vpop.f32.mrb[26].mxu0 }
 0x135   : > { %v750_v5 = vpop.f32.mrb[27].mxu0 }
 0x136   : > { %v751_v6 = vadd.f32 %v750_v5, %v749_v4  ;;  %444 = vrot.lane.b32.xlu0 %v1158_v3, %s929_s29 }
 0x138   : > { %v417_v7 = vmul.f32 %v751_v6, %v751_v6  ;;  %v752_v8 = vpop.f32.mrb[28].mxu0 }
 0x139   : > { %v753_v9 = vpop.f32.mrb[29].mxu0 }
 0x13a   : > { %v754_v10 = vadd.f32 %v753_v9, %v752_v8  ;;  %446 = vrot.lane.b32.xlu1 %v417_v7, %s929_s29 }
 0x13c   : > { %v418_v12 = vmul.f32 %v754_v10, %v754_v10  ;;  %v755_v13 = vpop.f32.mrb[30].mxu0 }
 0x13d   : > { %v756_v14 = vpop.f32.mrb[31].mxu0 }
 0x13e   : > { %v757_v15 = vadd.f32 %v756_v14, %v755_v13  ;;  %448 = vrot.lane.b32.xlu0 %v418_v12, %s929_s29 }
 0x140   : > { %v419_v16 = vmul.f32 %v757_v15, %v757_v15 }
 0x142   : > { %450 = vrot.lane.b32.xlu1 %v419_v16, %s929_s29 }
 0x178   : > { %v421_v17 = vpop.permute.xlu0 %420 }
 0x179   : > { %v452_v20 = vadd.f32 %v421_v17, %v1113_v19 }
 0x17c   : > { %v423_v18 = vpop.permute.xlu0 %422 }
 0x17d   : > { %v453_v21 = vadd.f32 %v423_v18, %v1117_v23 }
 0x17f   : > { %v848_v22 = vpack.c.bf16 %v453_v21, %v452_v20 }
 0x180   : > { %v425_v24 = vpop.permute.xlu1 %424 }
 0x181   : > { %849 = vmatprep.subr.bf16.mxu1 %v848_v22  ;;  %v454_v26 = vadd.f32 %v425_v24, %v1121_v27 }
 0x182   : > { %851 = vmatpush3.bf16.xpose.msra.mxu1 %v848_v22 }
 0x184   : > { %v427_v25 = vpop.permute.xlu1 %426 }
 0x185   : > { %v455_v28 = vadd.f32 %v427_v25, %v1125_v31 }
 0x187   : > { %v852_v29 = vpack.c.bf16 %v455_v28, %v454_v26 }
 0x188   : > { %v429_v30 = vpop.permute.xlu0 %428 }
 0x189   : > { %853 = vmatprep.subr.bf16.mxu1 %v852_v29  ;;  %v456_v33 = vadd.f32 %v429_v30, %v1129_v35 }
 0x18a   : > { %855 = vmatpush3.bf16.xpose.msra.mxu1 %v852_v29 }
 0x18c   : > { %v431_v32 = vpop.permute.xlu1 %430 }
 0x18d   : > { %v457_v19 = vadd.f32 %v431_v32, %v1133_v39 }
 0x18f   : > { %v856_v34 = vpack.c.bf16 %v457_v19, %v456_v33 }
 0x190   : > { %v433_v23 = vpop.permute.xlu0 %432 }
 0x191   : > { %857 = vmatprep.subr.bf16.mxu1 %v856_v34  ;;  %v458_v37 = vadd.f32 %v433_v23, %v1137_v43 }
 0x192   : > { %859 = vmatpush3.bf16.xpose.msra.mxu1 %v856_v34 }
 0x194   : > { %v435_v36 = vpop.permute.xlu1 %434 }
 0x195   : > { %v459_v27 = vadd.f32 %v435_v36, %v1141_v47 }
 0x197   : > { %v860_v38 = vpack.c.bf16 %v459_v27, %v458_v37 }
 0x198   : > { %v437_v31 = vpop.permute.xlu0 %436 }
 0x199   : > { %861 = vmatprep.subr.bf16.mxu1 %v860_v38  ;;  %v460_v41 = vadd.f32 %v437_v31, %v1145_v51 }
 0x19a   : > { %863 = vmatpush3.bf16.xpose.msra.mxu1 %v860_v38 }
 0x19c   : > { %v439_v40 = vpop.permute.xlu1 %438 }
 0x19d   : > { %v461_v35 = vadd.f32 %v439_v40, %v1149_v55 }
 0x19f   : > { %v864_v42 = vpack.c.bf16 %v461_v35, %v460_v41 }
 0x1a0   : > { %v441_v39 = vpop.permute.xlu0 %440 }
 0x1a1   : > { %865 = vmatprep.subr.bf16.mxu1 %v864_v42  ;;  %v462_v45 = vadd.f32 %v441_v39, %v1153_v59  ;;  %v471_v59 = vld [vmem:[%s1208_s2 + $0x18] sm:$0xff] }
 0x1a2   : > { %867 = vmatpush3.bf16.xpose.msra.mxu1 %v864_v42 }
 0x1a4   : > { %v443_v44 = vpop.permute.xlu1 %442 }
 0x1a5   : > { %v463_v46 = vadd.f32 %v443_v44, %v415_v63 }
 0x1a7   : > { %v868_v43 = vpack.c.bf16 %v463_v46, %v462_v45 }
 0x1a8   : > { %v445_v47 = vpop.permute.xlu0 %444 }
 0x1a9   : > { %869 = vmatprep.subr.bf16.mxu1 %v868_v43  ;;  %v464_v49 = vadd.f32 %v445_v47, %v1158_v3 }
 0x1aa   : > { %871 = vmatpush3.bf16.xpose.msra.mxu1 %v868_v43 }
 0x1ac   : > { %v447_v48 = vpop.permute.xlu1 %446 }
 0x1ad   : > { %v465_v50 = vadd.f32 %v447_v48, %v417_v7 }
 0x1af   : > { %v872_v52 = vpack.c.bf16 %v465_v50, %v464_v49 }
 0x1b0   : > { %v449_v51 = vpop.permute.xlu0 %448 }
 0x1b1   : > { %873 = vmatprep.subr.bf16.mxu1 %v872_v52  ;;  %v466_v54 = vadd.f32 %v449_v51, %v418_v12 }
 0x1b2   : > { %875 = vmatpush3.bf16.xpose.msra.mxu1 %v872_v52 }
 0x1b4   : > { %v451_v53 = vpop.permute.xlu1 %450 }
 0x1b5   : > { %v467_v55 = vadd.f32 %v451_v53, %v419_v16 }
 0x1b7   : > { %v876_v56 = vpack.c.bf16 %v467_v55, %v466_v54 }
 0x1b9   : > { %877 = vmatprep.subr.bf16.mxu1 %v876_v56 }
 0x1ba   : > { %879 = vmatpush3.bf16.xpose.msra.mxu1 %v876_v56 }
 0x1c1   : > { %811 = vmatmul.mubr.f32.vlgmr.msra.gmra.mrb[0].mxu1 %v469_v57 }
 0x1c2   : > { %813 = vmatprep.mubr.f32.mxu1 %v470_v58 }
 0x1c5   : > { %814 = vmatmul.mubr.f32.gmra.mrb[2].mxu1 %v471_v59 }
 0x294   : > { %v812_v60 = vpop.f32.mrb[0].mxu1  ;;  %567 = sbr.rel (!%p975_p4) target bundleno = 675 (0x2a3), region = 36 }
 0x295   : > { %558 = vst [vmem:[%s177_s14 + $0x8] sm:$0xff] %v812_v60  ;;  %v538_v61 = vpop.f32.mrb[1].mxu1 }
 0x296   : > { %557 = vst [vmem:[%s177_s14] sm:$0xff] %v538_v61 }
 0x298   : > { %v815_v62 = vpop.f32.mrb[2].mxu1 }
 0x299   : > { %560 = vst [vmem:[%s177_s14 + $0x18] sm:$0xff] %v815_v62  ;;  %v548_v63 = vpop.f32.mrb[3].mxu1 }
 0x29a   : > { %559 = vst [vmem:[%s177_s14 + $0x10] sm:$0xff] %v548_v63 }
 0x29c   : > { %v605_v1 = vld [vmem:[%s177_s14 + $0x8] sm:$0xff] }
 0x29d   : > { %v603_v0 = vld [vmem:[%s177_s14] sm:$0xff]  ;;  %606 = vst [vmem:[%s569_s21 + $0x10] sm:$0xff] %v605_v1 }
 0x29e   : > { %604 = vst [vmem:[%s569_s21] sm:$0xff] %v603_v0 }
 0x2a0   : > { %v609_v3 = vld [vmem:[%s177_s14 + $0x18] sm:$0xff] }
 0x2a1   : > { %v607_v2 = vld [vmem:[%s177_s14 + $0x10] sm:$0xff]  ;;  %610 = vst [vmem:[%s569_s21 + $0x30] sm:$0xff] %v609_v3 }
 0x2a2   : > { %608 = vst [vmem:[%s569_s21 + $0x20] sm:$0xff] %v607_v2 }
 0x2a3 PF: > { %p10_p8 = scmp.ge.s32.totalorder %s965_s16, 4   ;;  %s1211_s12 = smov %s923_s13 }
 0x2a4   : > { %s1212_s13 = smov %s973_s19  ;;  %s1213_s14 = smov %s965_s16 }
 0x2a5   :  { %12 = sbr.rel (!%p10_p8) target bundleno = 2 (0x2), region = 100 }

</bundles_post_ra>
